<compile_context>
chip_gen: v7x
topology: tpu7x:2x2x1
jax: 0.10.0
libtpu: 0.0.40
codegen_flags: <defaults>
</compile_context>

<pallas_src>
import functools
import math

import jax
import jax.numpy as jnp
from jax import lax
from jax.experimental import pallas as pl
from jax.experimental.pallas import tpu as pltpu


def _geglu_kernel(x_ref, w_ref, b_ref, o_ref, *, gelu_approx=False):
    # x_ref: (tm, dim_in)      MXU dtype (bf16 by default for f32 inputs)
    # w_ref: (dim_in, 2*tn)    same dtype; [:, :tn]=hidden cols, [:, tn:]=gate cols
    # b_ref: (1, 2*tn)         f32, same column ordering as w_ref
    # o_ref: (tm, tn)
    tn = o_ref.shape[1]
    # One fused 2*tn-wide MXU matmul in canonical (tm,K)@(K,N) orientation.
    proj = jnp.dot(x_ref[...], w_ref[...],
                   preferred_element_type=jnp.float32)          # (tm, 2*tn) f32
    proj = proj + b_ref[...].astype(jnp.float32)
    hidden = proj[:, :tn]
    gate = proj[:, tn:]
    if gelu_approx:
        # tanh approximation -> EUP slot (nearly free); slight numeric change.
        gelu_gate = jax.nn.gelu(gate, approximate=True)
    else:
        # Exact (erf) GELU — matches torch.nn.functional.gelu(approximate='none').
        gelu_gate = 0.5 * gate * (1.0 + lax.erf(gate * (1.0 / math.sqrt(2.0))))
    o_ref[...] = (hidden * gelu_gate).astype(o_ref.dtype)


def _round_up(x, m):
    return (x + m - 1) // m * m


def _vmem_capacity_bytes():
    try:
        cap = int(pltpu.get_tpu_info().vmem_capacity_bytes)
        if cap > 0:
            return cap
    except Exception:
        pass
    return 64 * 2**20  # conservative fallback (v7x-sized VMEM)


def geglu(x, weight, bias, *, tm=None, tn=None, matmul_dtype="auto",
          gelu_approx=False):
    """GEGLU forward.

    x:      (..., dim_in)
    weight: (2*dim_out, dim_in)  -- PyTorch nn.Linear weight layout
    bias:   (2*dim_out,)
    matmul_dtype: "auto" (default) casts f32 inputs to bf16 for the MXU
        (f32 accumulation + f32 GELU epilogue); None keeps the input dtype
        (exact f32 path); or pass an explicit dtype.
    returns (..., dim_out) in x.dtype
    """
    dim_in = x.shape[-1]
    two_dim_out, w_in = weight.shape
    assert w_in == dim_in, "weight/input dim mismatch"
    assert two_dim_out % 2 == 0, "weight must have 2*dim_out rows"
    dim_out = two_dim_out // 2

    lead_shape = x.shape[:-1]
    M = math.prod(lead_shape) if lead_shape else 1
    out_dtype = x.dtype

    # ---- MXU input dtype (bf16 default for f32 inputs; f32 accumulation) ----
    if matmul_dtype == "auto":
        mx_dtype = (jnp.bfloat16
                    if jnp.dtype(x.dtype) == jnp.dtype(jnp.float32)
                    else x.dtype)
    elif matmul_dtype is None:
        mx_dtype = x.dtype
    else:
        mx_dtype = matmul_dtype
    x_sz = jnp.dtype(mx_dtype).itemsize
    w_sz = x_sz
    o_sz = jnp.dtype(out_dtype).itemsize
    sub = 16 if x_sz < 4 else 8  # sublane multiple for packed dtypes

    # ---- generation-aware VMEM budget --------------------------------------
    cap = _vmem_capacity_bytes()
    budget = min(cap * 3 // 4, 100 * 2**20)          # ~48 MiB v7x, ~96 MiB v5e/v6e
    vmem_limit = int(min(cap - 8 * 2**20, max(32 * 2**20, budget)))

    def working_set(tm_, tn_, w_bufs):
        xb = 2 * tm_ * dim_in * x_sz                     # x tiles (double-buffered)
        wb = w_bufs * dim_in * (2 * tn_) * w_sz          # weight slab
        bb = 2 * (2 * tn_) * 4                           # bias (tiny)
        ob = 2 * tm_ * tn_ * o_sz                        # output tiles
        interm = tm_ * (2 * tn_) * 4 + 3 * tm_ * tn_ * 4  # f32 proj + epilogue temps
        return xb + wb + bb + ob + interm

    # ---- N (output-feature) tile: free multiple of 128; pad dim_out to it ---
    dim_out128 = _round_up(dim_out, 128)
    if tn is not None:
        tn_eff = max(128, int(tn) // 128 * 128)
    else:
        tn_eff = 128
        for cand in (512, 384, 256, 128):
            if cand > dim_out128:
                continue
            extra = _round_up(dim_out128, cand) - dim_out128
            if 4 * extra <= dim_out128:      # <= 25% extra padded compute
                tn_eff = cand
                break
        while tn_eff > 128 and working_set(sub, tn_eff, 1) > budget:
            tn_eff -= 128
    dim_out_pad = _round_up(dim_out, tn_eff)
    grid_n = dim_out_pad // tn_eff

    # ---- M (row) tile: largest that fits budget, then balanced over grid_m ---
    m_ru = _round_up(M, sub)
    if tm is not None:
        tm_fit = max(sub, int(tm) // sub * sub)
    else:
        tm_fit = sub
        for cand in (2048, 1536, 1024, 768, 512, 384, 256, 128, 64, 32, 16, 8):
            if cand % sub:
                continue
            if working_set(cand, tn_eff, 1) <= budget:
                tm_fit = cand
                break
        tm_fit = min(tm_fit, max(sub, m_ru))   # don't exceed what the data needs
    grid_m = pl.cdiv(M, tm_fit)
    tm_eff = _round_up(pl.cdiv(M, grid_m), sub)   # balance tiles; minimal padding
    m_pad = tm_eff * grid_m

    # ---- weight double-buffering only where VMEM allows (v5e/v6e) ----------
    w_bufs = 1
    if grid_n > 1 and cap >= 96 * 2**20 and working_set(tm_eff, tn_eff, 2) <= budget:
        w_bufs = 2

    # ---- operand prep: all casts / relayouts happen ONCE here ---------------
    x2d = x.reshape(M, dim_in)
    if m_pad != M:
        x2d = jnp.pad(x2d, ((0, m_pad - M), (0, 0)))
    if x2d.dtype != jnp.dtype(mx_dtype):
        x2d = x2d.astype(mx_dtype)

    # (2*dim_out, dim_in) -> (dim_in, grid_n * 2 * tn); column block n holds
    # [hidden cols n*tn:(n+1)*tn | gate cols n*tn:(n+1)*tn].
    w3 = weight.reshape(2, dim_out, dim_in)
    if dim_out_pad != dim_out:
        w3 = jnp.pad(w3, ((0, 0), (0, dim_out_pad - dim_out), (0, 0)))
    w4 = (w3.reshape(2, grid_n, tn_eff, dim_in)
            .transpose(3, 1, 0, 2)
            .reshape(dim_in, grid_n * 2 * tn_eff)
            .astype(mx_dtype))

    b2 = bias.reshape(2, dim_out)
    if dim_out_pad != dim_out:
        b2 = jnp.pad(b2, ((0, 0), (0, dim_out_pad - dim_out)))
    b4 = (b2.reshape(2, grid_n, tn_eff)
            .transpose(1, 0, 2)
            .reshape(1, grid_n * 2 * tn_eff)
            .astype(jnp.float32))

    cost = pl.CostEstimate(
        flops=4 * M * dim_out * dim_in,
        transcendentals=M * dim_out,
        bytes_accessed=(M * dim_in * x_sz + w4.size * w_sz + b4.size * 4
                        + M * dim_out * o_sz),
    )

    kernel = functools.partial(_geglu_kernel, gelu_approx=gelu_approx)

    out2d = pl.pallas_call(
        kernel,
        out_shape=jax.ShapeDtypeStruct((m_pad, dim_out_pad), out_dtype),
        grid_spec=pltpu.PrefetchScalarGridSpec(
            num_scalar_prefetch=0,
            # N outer, M inner: the weight slab is read from HBM exactly once.
            grid=(grid_n, grid_m),
            in_specs=[
                pl.BlockSpec((tm_eff, dim_in), lambda n, m: (m, 0)),
                pl.BlockSpec((dim_in, 2 * tn_eff), lambda n, m: (0, n),
                             pipeline_mode=pl.Buffered(w_bufs)),
                pl.BlockSpec((1, 2 * tn_eff), lambda n, m: (0, n),
                             pipeline_mode=pl.Buffered(1)),
            ],
            out_specs=pl.BlockSpec((tm_eff, tn_eff), lambda n, m: (m, n)),
        ),
        compiler_params=pltpu.CompilerParams(
            dimension_semantics=("parallel", "parallel"),
            vmem_limit_bytes=vmem_limit,
        ),
        cost_estimate=cost,
    )(x2d, w4, b4)

    out = out2d[:M, :dim_out]
    return out.reshape(*lead_shape, dim_out)


def geglu_ref(x, weight, bias, matmul_dtype=None):
    """Pure-JAX reference matching the PyTorch forward (optionally with the
    same reduced-precision MXU-input cast as the kernel; f32 accumulation)."""
    if matmul_dtype is not None:
        xd = x.astype(matmul_dtype)
        wd = weight.astype(matmul_dtype)
    else:
        xd, wd = x, weight
    proj = jnp.dot(xd, wd.T, preferred_element_type=jnp.float32)
    proj = proj + bias.astype(jnp.float32)
    hidden, gate = jnp.split(proj, 2, axis=-1)
    out = hidden * jax.nn.gelu(gate, approximate=False)
    return out.astype(x.dtype)


if __name__ == "__main__":
    key = jax.random.PRNGKey(0)

    cases = [
        # default (bf16 MXU path) at the module's natural small scale
        dict(B=2, S=8, dim_in=32, dim_out=32, tm=None, tn=None,
             matmul_dtype="auto", atol=1e-4, rtol=1e-4),
        # ragged M, non-128-multiple dim_out; forced multi-tile grid (2x3)
        dict(B=2, S=72, dim_in=96, dim_out=160, tm=64, tn=128,
             matmul_dtype="auto", atol=1e-4, rtol=1e-4),
        # exact f32 MXU path (tight match against the f32 reference)
        dict(B=2, S=72, dim_in=96, dim_out=160, tm=None, tn=None,
             matmul_dtype=None, atol=1e-5, rtol=1e-5),
    ]

    for cfg in cases:
        B, S, dim_in, dim_out = cfg["B"], cfg["S"], cfg["dim_in"], cfg["dim_out"]
        k_x, k_w, k_b = jax.random.split(
            jax.random.fold_in(key, dim_in * dim_out), 3)
        x = jax.random.normal(k_x, (B, S, dim_in), dtype=jnp.float32)
        # Deterministic init mimicking nn.Linear's uniform(-1/sqrt(fan_in), +)
        bound = 1.0 / math.sqrt(dim_in)
        weight = jax.random.uniform(k_w, (2 * dim_out, dim_in),
                                    minval=-bound, maxval=bound,
                                    dtype=jnp.float32)
        bias = jax.random.uniform(k_b, (2 * dim_out,),
                                  minval=-bound, maxval=bound,
                                  dtype=jnp.float32)

        out = geglu(x, weight, bias, tm=cfg["tm"], tn=cfg["tn"],
                    matmul_dtype=cfg["matmul_dtype"])
        out = jax.block_until_ready(out)
        assert out.shape == (B, S, dim_out)

        md = cfg["matmul_dtype"]
        ref_md = jnp.bfloat16 if md == "auto" else md
        ref = geglu_ref(x, weight, bias, matmul_dtype=ref_md)
        assert jnp.allclose(out, ref, atol=cfg["atol"], rtol=cfg["rtol"]), \
            f"mismatch vs reference for case {cfg}"

    print("KERNEL_OK")
</pallas_src>

<mosaic_0001>
module attributes {stable_mosaic.version = 11 : i64} {
  func.func @_geglu_kernel(%arg0: i32, %arg1: i32, %arg2: memref<16x32xbf16, #tpu.memory_space<vmem>>, %arg3: memref<32x256xbf16, #tpu.memory_space<vmem>>, %arg4: memref<1x256xf32, #tpu.memory_space<vmem>>, %arg5: memref<16x128xf32, #tpu.memory_space<vmem>>) attributes {dimension_semantics = [#tpu.dimension_semantics<parallel>, #tpu.dimension_semantics<parallel>], iteration_bounds = array<i64: 1, 1>, scalar_prefetch = 0 : i64, scratch_operands = 0 : i64, tpu.core_type = #tpu.core_type<tc>, window_params = [{transform_indices = @transform_0, window_bounds = array<i64: 16, 32>}, {pipeline_mode = #tpu.pipeline_mode<synchronous>, transform_indices = @transform_1, window_bounds = array<i64: 32, 256>}, {pipeline_mode = #tpu.pipeline_mode<synchronous>, transform_indices = @transform_2, window_bounds = array<i64: 1, 256>}, {transform_indices = @transform_3, window_bounds = array<i64: 16, 128>}]} {
    %c0 = arith.constant 0 : index
    %c0_0 = arith.constant 0 : index
    %0 = vector.load %arg2[%c0, %c0_0] : memref<16x32xbf16, #tpu.memory_space<vmem>>, vector<16x32xbf16>
    %c0_1 = arith.constant 0 : index
    %c0_2 = arith.constant 0 : index
    %1 = vector.load %arg3[%c0_1, %c0_2] : memref<32x256xbf16, #tpu.memory_space<vmem>>, vector<32x256xbf16>
    %cst = arith.constant dense<0.000000e+00> : vector<16x256xf32>
    %2 = tpu.matmul %0, %1, %cst {dimension_numbers = #tpu.dot_dimension_numbers<[1], [0], [0], [1], [0, 0, 1, 1], [], []>} : vector<16x32xbf16>, vector<32x256xbf16>, vector<16x256xf32> -> vector<16x256xf32>
    %c0_3 = arith.constant 0 : index
    %c0_4 = arith.constant 0 : index
    %3 = vector.load %arg4[%c0_3, %c0_4] : memref<1x256xf32, #tpu.memory_space<vmem>>, vector<1x256xf32>
    %4 = vector.broadcast %3 : vector<1x256xf32> to vector<16x256xf32>
    %5 = arith.addf %2, %4 : vector<16x256xf32>
    %6 = vector.extract_strided_slice %5 {offsets = [0, 0], sizes = [16, 128], strides = [1, 1]} : vector<16x256xf32> to vector<16x128xf32>
    %7 = vector.extract_strided_slice %5 {offsets = [0, 128], sizes = [16, 128], strides = [1, 1]} : vector<16x256xf32> to vector<16x128xf32>
    %cst_5 = arith.constant 5.000000e-01 : f32
    %8 = vector.broadcast %cst_5 : f32 to vector<16x128xf32>
    %9 = arith.mulf %8, %7 : vector<16x128xf32>
    %cst_6 = arith.constant 0.707106769 : f32
    %10 = vector.broadcast %cst_6 : f32 to vector<16x128xf32>
    %11 = arith.mulf %7, %10 : vector<16x128xf32>
    %12 = math.erf %11 : vector<16x128xf32>
    %cst_7 = arith.constant 1.000000e+00 : f32
    %13 = vector.broadcast %cst_7 : f32 to vector<16x128xf32>
    %14 = arith.addf %13, %12 : vector<16x128xf32>
    %15 = arith.mulf %9, %14 : vector<16x128xf32>
    %16 = arith.mulf %6, %15 : vector<16x128xf32>
    %c0_8 = arith.constant 0 : index
    %c0_9 = arith.constant 0 : index
    %17 = vector.load %arg5[%c0_8, %c0_9] : memref<16x128xf32, #tpu.memory_space<vmem>>, vector<16x128xf32>
    tpu.vector_store %arg5[%c0_8, %c0_9], %16 {strides = array<i32>} : memref<16x128xf32, #tpu.memory_space<vmem>>, vector<16x128xf32>,
    return
  }
  func.func @transform_0(%arg0: i32, %arg1: i32) -> (i32, i32) {
    %c0_i32 = arith.constant 0 : i32
    %c0_i32_0 = arith.constant 0 : i32
    return %arg1, %c0_i32 : i32, i32
  }
  func.func @transform_1(%arg0: i32, %arg1: i32) -> (i32, i32) {
    %c0_i32 = arith.constant 0 : i32
    %c0_i32_0 = arith.constant 0 : i32
    return %c0_i32, %arg0 : i32, i32
  }
  func.func @transform_2(%arg0: i32, %arg1: i32) -> (i32, i32) {
    %c0_i32 = arith.constant 0 : i32
    %c0_i32_0 = arith.constant 0 : i32
    return %c0_i32, %arg0 : i32, i32
  }
  func.func @transform_3(%arg0: i32, %arg1: i32) -> (i32, i32) {
    %c0_i32 = arith.constant 0 : i32
    return %arg1, %arg0 : i32, i32
  }
}

</mosaic_0001>

<bundles_post_ra>
// kernel: tpu_custom_call.1
= control target key start
LH: loop header
LB: loop body
LE: loop exit
PB: predicated region body
PF: predicated region fallthrough
CT: control target
= control target key end

     0   :  { %8 = vsyncpa [#allocation3], 0  ;;  %s336_s0 = inlined_call_operand.hbm [shape: bf16[16,32], index: 0, kind: input, shape index: {}]   ;;  %s337_s1 = inlined_call_operand.hbm [shape: bf16[32,256], index: 1, kind: input, shape index: {}]   ;;  %s338_s2 = inlined_call_operand.vmem [shape: f32[1,256], index: 2, kind: input, shape index: {}]   ;;  %s339_s3 = inlined_call_operand.hbm [shape: f32[16,128], index: 3, kind: output, shape index: {}]  }
   0x1   :  { %9 = vsyncpa [#allocation6], 0 }
   0x2   :  { %10 = vsyncpa [#allocation4], 0  ;;  %s263_s12 = smov [#allocation2]   ;;  %s191_s16 = scalar_lea.hbm %s336_s0, 128 }
   0x3   :  { %s16_s13 = sshll.u32 %s263_s12, 4  ;;  %p192_p0 = scmp.ne.s32.totalorder %s336_s0, %s191_s16  ;;  %s17_s13 = int_to_ptr.vmem [resolvable:$true] %s16_s13 }
   0x4   :  { %p195_p1 = scmp.lt.u32.totalorder %s191_s16, %s336_s0 }
   0x6   :  { %p197_p2 = pnand %p195_p1, %p192_p0 }
   0x8   :  { %200 = shalt.err (!%p197_p2)
}
   0x9   :  { %s201_s21 = scalar_lea.vmem %s17_s13, 128  ;;  %p206_p4 = scmp.lt.s32.totalorder %s17_s13, %s17_s13 }
   0xa   :  { %p202_p3 = scmp.ne.s32.totalorder %s17_s13, %s201_s21  ;;  %p207_p5 = scmp.lt.s32.totalorder %s201_s21, %s201_s21 }
   0xc   :  { %p208_p6 = por %p207_p5, %p206_p4 }
   0xe   :  { %p209_p7 = pnand %p208_p6, %p202_p3 }
  0x10   :  { %212 = shalt.err (!%p209_p7)
}
  0x11   :  { %s264_s22 = smov 64   ;;  %s265_s23 = smov 4  }
  0x12   :  { %22 = dma.hbm_to_vmem [thread:$0]  %s336_s0, 128, %s17_s13, [#allocation3], %s264_s22, %s264_s22, %s265_s23  }
  0x13   :  { %s266_s26 = smov [#allocation5]   ;;  %s213_s30 = scalar_lea.hbm %s337_s1, 512 }
  0x14   :  { %s28_s27 = sshll.u32 %s266_s26, 4  ;;  %p214_p8 = scmp.ne.s32.totalorder %s337_s1, %s213_s30  ;;  %s29_s27 = int_to_ptr.vmem [resolvable:$true] %s28_s27 }
  0x15   :  { %p217_p9 = scmp.lt.u32.totalorder %s213_s30, %s337_s1 }
  0x17   :  { %p219_p10 = pnand %p217_p9, %p214_p8 }
  0x19   :  { %222 = shalt.err (!%p219_p10)
}
  0x1a   :  { %s223_s8 = scalar_lea.vmem %s29_s27, 512  ;;  %p228_p12 = scmp.lt.s32.totalorder %s29_s27, %s29_s27 }
  0x1b   :  { %p224_p11 = scmp.ne.s32.totalorder %s29_s27, %s223_s8  ;;  %p229_p13 = scmp.lt.s32.totalorder %s223_s8, %s223_s8 }
  0x1d   :  { %p230_p0 = por %p229_p13, %p228_p12 }
  0x1f   :  { %p231_p1 = pnand %p230_p0, %p224_p11 }
  0x21   :  { %234 = shalt.err (!%p231_p1)
}
  0x22   :  { %s267_s0 = smov 128   ;;  %s268_s9 = smov 8  }
  0x23   :  { %34 = dma.hbm_to_vmem [thread:$0]  %s337_s1, 512, %s29_s27, [#allocation6], %s267_s0, %s267_s0, %s268_s9  }
  0x24   :  { %257 = dma.done.wait [#allocation3], 128  }
  0x25   :  { %258 = vsyncadd [#allocation3], 4294967168 }
  0x26   :  { %259 = dma.done.wait [#allocation6], 512  }
  0x27   :  { %260 = vsyncadd [#allocation6], 4294966784  ;;  %v269_v0 = vmov 0   ;;  %v180_v1 = vld [vmem:[#allocation5 + $0x4] ss:$8 sps:$4 sm:$0xff]   ;;  %v186_v5 = vld [vmem:[#allocation2] sm:$0xff]   ;;  %v52_v6 = vlaneseq }
  0x28   :  { %123 = vmatprep.mubr.bf16.mxu0 %v269_v0  ;;  %v182_v2 = vld [vmem:[#allocation5] ss:$8 sps:$4 sm:$0xff]   ;;  %91 = vmatprep.subr.bf16.mxu0 %v180_v1  ;;  %v183_v3 = vld [vmem:[#allocation5 + $0x14] ss:$8 sps:$4 sm:$0xff]   ;;  %v185_v4 = vld [vmem:[#allocation5 + $0x10] ss:$8 sps:$4 sm:$0xff]  }
  0x29   :  { %92 = vmatpush1.bf16.msra.mxu0 %v182_v2  ;;  %vm87_vm0 = vcmask 261120   ;;  %v53_v7 = vshrl.u32 %v52_v6, 7  ;;  %v50_v9 = vld [vmem:[%s338_s2] sm:$0x3]  ;;  %s270_s2 = smov [#allocation7]  }
  0x2a   :  { %93 = vmatprep.subr.bf16.mxu0 %v183_v3  ;;  %s153_s13 = sshll.u32 %s270_s2, 4  ;;  %s154_s13 = int_to_ptr.vmem [resolvable:$true] %s153_s13 }
  0x2b   :  { %v58_v8 = vsub.s32 1, %v53_v7  ;;  %v54_v19 = vsub.s32 0, %v53_v7  ;;  %s235_s14 = scalar_lea.vmem %s154_s13, 256  ;;  %p240_p3 = scmp.lt.s32.totalorder %s154_s13, %s154_s13 }
  0x2c   :  { %p236_p2 = scmp.ne.s32.totalorder %s154_s13, %s235_s14  ;;  %p241_p4 = scmp.lt.s32.totalorder %s235_s14, %s235_s14 }
  0x2d   :  { %94 = vmatpush1.bf16.msra.mxu0 %v185_v4  ;;  %v59_v10 = vrot.slane %v50_v9, %v58_v8  ;;  %v55_v20 = vrot.slane %v50_v9, %v54_v19 }
  0x2e   :  { %p242_p5 = por %p241_p4, %p240_p3 }
  0x30   :  { %171 = vmatmul.mubr.msk.bf16.vlgmr.msra.gmra.mrb[0].mxu0 %vm87_vm0, %v186_v5  ;;  %p243_p6 = pnand %p242_p5, %p236_p2 }
 0x103   :  { %v125_v11 = vpop.f32.mrb[0].mxu0 }
 0x104   :  { %v127_v12 = vpop.f32.mrb[1].mxu0  ;;  %v126_v25 = vadd.f32 %v125_v11, %v55_v20 }
 0x105   :  { %v128_v13 = vadd.f32 %v127_v12, %v59_v10  ;;  %v129_v14 = vpop.f32.mrb[2].mxu0 }
 0x106   :  { %v131_v15 = vpop.f32.mrb[3].mxu0  ;;  %v130_v29 = vadd.f32 %v129_v14, %v55_v20 }
 0x107   :  { %v136_v16 = vmul.f32 0.70710677, %v128_v13  ;;  %v132_v17 = vadd.f32 %v131_v15, %v59_v10  ;;  %v134_v22 = vmul.f32 0.5, %v128_v13 }
 0x109   :  { %187 = verf.f32 %v136_v16  ;;  %v137_v18 = vmul.f32 0.70710677, %v132_v17  ;;  %v135_v27 = vmul.f32 0.5, %v132_v17 }
 0x10b   :  { %189 = verf.f32 %v137_v18 }
 0x113   :  { %v188_v21 = vpop.eup %187 }
 0x114   :  { %v140_v23 = vadd.f32 1.0, %v188_v21 }
 0x115   :  { %v190_v24 = vpop.eup %189 }
 0x116   :  { %v142_v26 = vmul.f32 %v140_v23, %v134_v22  ;;  %v141_v28 = vadd.f32 1.0, %v190_v24 }
 0x118   :  { %v143_v30 = vmul.f32 %v141_v28, %v135_v27  ;;  %v144_v31 = vmul.f32 %v142_v26, %v126_v25 }
 0x11a   :  { %v145_v32 = vmul.f32 %v143_v30, %v130_v29  ;;  %146 = vst [vmem:[#allocation7] sm:$0xff] %v144_v31 }
 0x11c   :  { %147 = vst [vmem:[#allocation7 + $0x8] sm:$0xff] %v145_v32 }
 0x11d   :  { %246 = shalt.err (!%p243_p6)
}
 0x11e   :  { %s247_s17 = scalar_lea.hbm %s339_s3, 256 }
 0x11f   :  { %p248_p7 = scmp.ne.s32.totalorder %s339_s3, %s247_s17  ;;  %p251_p8 = scmp.lt.u32.totalorder %s247_s17, %s339_s3 }
 0x121   :  { %p253_p9 = pnand %p251_p8, %p248_p7 }
 0x123   :  { %256 = shalt.err (!%p253_p9)
}
 0x124   :  { %159 = dma.vmem_to_hbm [thread:$0]  %s154_s13, 256, %s339_s3, [#allocation4], %s267_s0, %s267_s0, %s268_s9  }
 0x125   :  { %261 = dma.done.wait [#allocation4], 256  }
 0x126   :  { %262 = vsyncadd [#allocation4], 4294967040 }
 0x127   :  { %163 = vsyncpa [#allocation3], 1 }
 0x128   :  { %164 = vsyncpa [#allocation6], 1 }
 0x129   :  { %165 = vsyncpa [#allocation4], 1 }

</bundles_post_ra>
